<compile_context>
chip_gen: v5e
topology: v5e:2x2
jax: 0.10.0
libtpu: 0.0.40
codegen_flags: <defaults>
</compile_context>

<pallas_src>
import functools

import jax
import jax.numpy as jnp
from jax.experimental import pallas as pl
from jax.experimental.pallas import tpu as pltpu

_LANE = 128
_SUBLANE = 8
# Conservative scoped-VMEM cap that is safe on v5e/v6e (128 MiB) and v7x (64 MiB).
_VMEM_CAP_BYTES = 48 * 1024 * 1024
_VMEM_SLACK_BYTES = 2 * 1024 * 1024


def _round_up(n, m):
    return ((n + m - 1) // m) * m


def _vmem_bytes(block_b, feat, hid, out_cols, in_itemsize, out_itemsize, with_bias):
    """Rough VMEM footprint of the pipelined buffers, incl. (8,128) tile padding."""
    bb = _round_up(block_b, _SUBLANE)
    f_lanes = _round_up(feat, _LANE)
    h_lanes = _round_up(hid, _LANE)
    o_lanes = _round_up(out_cols, _LANE)
    x_b = 2 * bb * f_lanes * in_itemsize                         # double-buffered
    w_b = 2 * _round_up(feat, _SUBLANE) * h_lanes * in_itemsize  # grid-invariant
    b_b = 2 * _SUBLANE * h_lanes * 4 if with_bias else 0
    o_b = 2 * bb * o_lanes * out_itemsize                        # double-buffered
    return x_b + w_b + b_b + o_b


def _pick_block_b(batch, feat, hid, out_cols, in_itemsize, out_itemsize,
                  with_bias, block_b):
    """Pick a batch tile: as large as requested, shrunk to fit the VMEM budget."""
    bb = max(_SUBLANE, min(block_b, _round_up(batch, _SUBLANE)))
    while bb > _SUBLANE and (_vmem_bytes(bb, feat, hid, out_cols, in_itemsize,
                                         out_itemsize, with_bias)
                             + _VMEM_SLACK_BYTES) > _VMEM_CAP_BYTES:
        bb //= 2
    bb = _round_up(bb, _SUBLANE)
    # Keep >= 2 grid steps for large batches so v7x can shard the "parallel"
    # axis across both TensorCores.
    if pl.cdiv(batch, bb) < 2 and batch >= 2 * _LANE:
        bb = _round_up(pl.cdiv(batch, 2), _SUBLANE)
    return bb


def _rff_learnable_kernel(x_ref, w_ref, b_ref, o_ref):
    # x_ref: (tb, F)  w_ref: (F, H)  b_ref: (1, H)  o_ref: (tb, 2H)
    h = w_ref.shape[1]
    z = jnp.dot(x_ref[...], w_ref[...], preferred_element_type=jnp.float32)
    z = z + b_ref[...].astype(jnp.float32)
    # Static half-width slices; lane-dense when H % 128 == 0.
    o_ref[:, :h] = jnp.sin(z).astype(o_ref.dtype)
    o_ref[:, h:] = jnp.cos(z).astype(o_ref.dtype)


def _rff_fixed_kernel(x_ref, n_ref, o_ref):
    # Non-learnable path: sin(x @ noise)
    z = jnp.dot(x_ref[...], n_ref[...], preferred_element_type=jnp.float32)
    o_ref[...] = jnp.sin(z).astype(o_ref.dtype)


@functools.partial(jax.jit, static_argnames=("block_b",))
def rff_layer_learnable(x, w_t, b, *, block_b=256):
    """x: (B, F), w_t: (F, H) (= W.T of nn.Linear), b: (H,) -> (B, 2H)."""
    B, F = x.shape
    H = w_t.shape[1]
    out_dtype = x.dtype
    in_isz = jnp.dtype(x.dtype).itemsize
    out_isz = jnp.dtype(out_dtype).itemsize

    bb = _pick_block_b(B, F, H, 2 * H, in_isz, out_isz, True, block_b)
    grid = (pl.cdiv(B, bb),)
    b2 = b.reshape(1, H)

    vmem_limit = int(min(
        _VMEM_CAP_BYTES,
        max(32 * 1024 * 1024,
            _vmem_bytes(bb, F, H, 2 * H, in_isz, out_isz, True) + _VMEM_SLACK_BYTES)))

    cost = pl.CostEstimate(
        flops=2 * B * F * H,
        transcendentals=2 * B * H,
        bytes_accessed=(B * F * in_isz + F * H * jnp.dtype(w_t.dtype).itemsize
                        + H * jnp.dtype(b.dtype).itemsize + B * 2 * H * out_isz),
    )

    return pl.pallas_call(
        _rff_learnable_kernel,
        out_shape=jax.ShapeDtypeStruct((B, 2 * H), out_dtype),
        grid_spec=pltpu.PrefetchScalarGridSpec(
            num_scalar_prefetch=0,
            grid=grid,
            in_specs=[
                pl.BlockSpec((bb, F), lambda i: (i, 0)),
                # Grid-invariant blocks: DMA'd once, reused every step.
                pl.BlockSpec((F, H), lambda i: (0, 0)),
                pl.BlockSpec((1, H), lambda i: (0, 0)),
            ],
            out_specs=pl.BlockSpec((bb, 2 * H), lambda i: (i, 0)),
        ),
        compiler_params=pltpu.CompilerParams(
            dimension_semantics=("parallel",),
            vmem_limit_bytes=vmem_limit,
        ),
        cost_estimate=cost,
    )(x, w_t, b2)


@functools.partial(jax.jit, static_argnames=("block_b",))
def rff_layer_fixed(x, noise, *, block_b=256):
    """Non-learnable path. x: (B, F), noise: (F, H) -> sin(x @ noise), (B, H)."""
    B, F = x.shape
    H = noise.shape[1]
    out_dtype = x.dtype
    in_isz = jnp.dtype(x.dtype).itemsize
    out_isz = jnp.dtype(out_dtype).itemsize

    bb = _pick_block_b(B, F, H, H, in_isz, out_isz, False, block_b)
    grid = (pl.cdiv(B, bb),)

    vmem_limit = int(min(
        _VMEM_CAP_BYTES,
        max(32 * 1024 * 1024,
            _vmem_bytes(bb, F, H, H, in_isz, out_isz, False) + _VMEM_SLACK_BYTES)))

    cost = pl.CostEstimate(
        flops=2 * B * F * H,
        transcendentals=B * H,
        bytes_accessed=(B * F * in_isz
                        + F * H * jnp.dtype(noise.dtype).itemsize
                        + B * H * out_isz),
    )

    return pl.pallas_call(
        _rff_fixed_kernel,
        out_shape=jax.ShapeDtypeStruct((B, H), out_dtype),
        grid_spec=pltpu.PrefetchScalarGridSpec(
            num_scalar_prefetch=0,
            grid=grid,
            in_specs=[
                pl.BlockSpec((bb, F), lambda i: (i, 0)),
                pl.BlockSpec((F, H), lambda i: (0, 0)),   # grid-invariant
            ],
            out_specs=pl.BlockSpec((bb, H), lambda i: (i, 0)),
        ),
        compiler_params=pltpu.CompilerParams(
            dimension_semantics=("parallel",),
            vmem_limit_bytes=vmem_limit,
        ),
        cost_estimate=cost,
    )(x, noise)


if __name__ == "__main__":
    key = jax.random.PRNGKey(0)
    kx, kw, kb, kn = jax.random.split(key, 4)

    # Small demo shapes (fast compile / run); the wrapper auto-tiles larger batches.
    batch = 16
    feature_dim = 8
    hidden_dim = 32

    x = jax.random.normal(kx, (batch, feature_dim), dtype=jnp.float32)

    # nn.Linear(feature_dim, hidden_dim) init: U(-1/sqrt(fan_in), 1/sqrt(fan_in))
    bound = 1.0 / jnp.sqrt(jnp.float32(feature_dim))
    w = jax.random.uniform(kw, (hidden_dim, feature_dim), jnp.float32, -bound, bound)
    b = jax.random.uniform(kb, (hidden_dim,), jnp.float32, -bound, bound)
    w_t = w.T  # (F, H), pre-transposed for the kernel

    # --- learnable=True path ---
    out = jax.block_until_ready(rff_layer_learnable(x, w_t, b))
    z_ref = x @ w_t + b
    ref = jnp.concatenate([jnp.sin(z_ref), jnp.cos(z_ref)], axis=-1)
    assert out.shape == (batch, 2 * hidden_dim)
    assert jnp.allclose(out, ref, atol=1e-5, rtol=1e-5), float(jnp.max(jnp.abs(out - ref)))

    # --- learnable=False path (buffer `noise`) ---
    noise = jax.random.normal(kn, (feature_dim, hidden_dim), dtype=jnp.float32)
    out2 = jax.block_until_ready(rff_layer_fixed(x, noise))
    ref2 = jnp.sin(x @ noise)
    assert out2.shape == (batch, hidden_dim)
    assert jnp.allclose(out2, ref2, atol=1e-5, rtol=1e-5), float(jnp.max(jnp.abs(out2 - ref2)))

    print("KERNEL_OK")
</pallas_src>

<mosaic_0001>
module attributes {stable_mosaic.version = 11 : i64} {
  func.func @_rff_learnable_kernel(%arg0: i32, %arg1: memref<16x8xf32, #tpu.memory_space<vmem>>, %arg2: memref<8x32xf32, #tpu.memory_space<vmem>>, %arg3: memref<1x32xf32, #tpu.memory_space<vmem>>, %arg4: memref<16x64xf32, #tpu.memory_space<vmem>>) attributes {dimension_semantics = [#tpu.dimension_semantics<parallel>], iteration_bounds = array<i64: 1>, scalar_prefetch = 0 : i64, scratch_operands = 0 : i64, tpu.core_type = #tpu.core_type<tc>, window_params = [{transform_indices = @transform_0, window_bounds = array<i64: 16, 8>}, {pipeline_mode = #tpu.pipeline_mode<synchronous>, transform_indices = @transform_1, window_bounds = array<i64: 8, 32>}, {pipeline_mode = #tpu.pipeline_mode<synchronous>, transform_indices = @transform_2, window_bounds = array<i64: 1, 32>}, {transform_indices = @transform_3, window_bounds = array<i64: 16, 64>}]} {
    %c0 = arith.constant 0 : index
    %c0_0 = arith.constant 0 : index
    %0 = vector.load %arg1[%c0, %c0_0] : memref<16x8xf32, #tpu.memory_space<vmem>>, vector<16x8xf32>
    %c0_1 = arith.constant 0 : index
    %c0_2 = arith.constant 0 : index
    %1 = vector.load %arg2[%c0_1, %c0_2] : memref<8x32xf32, #tpu.memory_space<vmem>>, vector<8x32xf32>
    %cst = arith.constant dense<0.000000e+00> : vector<16x32xf32>
    %2 = tpu.matmul %0, %1, %cst {dimension_numbers = #tpu.dot_dimension_numbers<[1], [0], [0], [1], [0, 0, 1, 1], [], []>} : vector<16x8xf32>, vector<8x32xf32>, vector<16x32xf32> -> vector<16x32xf32>
    %c0_3 = arith.constant 0 : index
    %c0_4 = arith.constant 0 : index
    %3 = vector.load %arg3[%c0_3, %c0_4] : memref<1x32xf32, #tpu.memory_space<vmem>>, vector<1x32xf32>
    %4 = vector.broadcast %3 : vector<1x32xf32> to vector<16x32xf32>
    %5 = arith.addf %2, %4 : vector<16x32xf32>
    %6 = math.sin %5 : vector<16x32xf32>
    %c0_5 = arith.constant 0 : index
    %c0_6 = arith.constant 0 : index
    %7 = vector.load %arg4[%c0_5, %c0_6] : memref<16x64xf32, #tpu.memory_space<vmem>>, vector<16x32xf32>
    tpu.vector_store %arg4[%c0_5, %c0_6], %6 {strides = array<i32>} : memref<16x64xf32, #tpu.memory_space<vmem>>, vector<16x32xf32>,
    %8 = math.cos %5 : vector<16x32xf32>
    %c0_7 = arith.constant 0 : index
    %c32 = arith.constant 32 : index
    %9 = vector.load %arg4[%c0_7, %c32] : memref<16x64xf32, #tpu.memory_space<vmem>>, vector<16x32xf32>
    tpu.vector_store %arg4[%c0_7, %c32], %8 {strides = array<i32>} : memref<16x64xf32, #tpu.memory_space<vmem>>, vector<16x32xf32>,
    return
  }
  func.func @transform_0(%arg0: i32) -> (i32, i32) {
    %c0_i32 = arith.constant 0 : i32
    %c0_i32_0 = arith.constant 0 : i32
    return %arg0, %c0_i32 : i32, i32
  }
  func.func @transform_1(%arg0: i32) -> (i32, i32) {
    %c0_i32 = arith.constant 0 : i32
    %c0_i32_0 = arith.constant 0 : i32
    %c0_i32_1 = arith.constant 0 : i32
    return %c0_i32, %c0_i32_0 : i32, i32
  }
  func.func @transform_2(%arg0: i32) -> (i32, i32) {
    %c0_i32 = arith.constant 0 : i32
    %c0_i32_0 = arith.constant 0 : i32
    %c0_i32_1 = arith.constant 0 : i32
    return %c0_i32, %c0_i32_0 : i32, i32
  }
  func.func @transform_3(%arg0: i32) -> (i32, i32) {
    %c0_i32 = arith.constant 0 : i32
    %c0_i32_0 = arith.constant 0 : i32
    return %arg0, %c0_i32 : i32, i32
  }
}

</mosaic_0001>

<bundles_post_ra>
// kernel: rff_layer_learnable.1
= control target key start
LH: loop header
LB: loop body
LE: loop exit
PB: predicated region body
PF: predicated region fallthrough
CT: control target
= control target key end

     0   :  { %vm22_vm0 = vcmask 64512   ;;  %s949_s0 = inlined_call_operand.vmem [shape: f32[16,8], index: 0, kind: input, shape index: {}]   ;;  %s950_s1 = inlined_call_operand.vmem [shape: f32[8,32], index: 1, kind: input, shape index: {}]   ;;  %s951_s2 = inlined_call_operand.vmem [shape: f32[1,32], index: 2, kind: input, shape index: {}]   ;;  %s952_s3 = inlined_call_operand.hbm [shape: f32[16,64], index: 3, kind: output, shape index: {}]  }
   0x1   :  { %v17_v0 = vld [vmem:[%s950_s1] sm:$0xff]  ;;  %v16_v2 = vld [vmem:[%s949_s0 + $0x8] sm:$0xff] }
   0x2   :  { %v15_v1 = vld [vmem:[%s949_s0] sm:$0xff]  ;;  %44 = vmatpush.msra.mxu0 %v17_v0  ;;  %716 = vmatpush.msra.mxu1 %v17_v0 }
   0x3   :  { %8 = vsyncpa [#allocation3], 0  ;;  %702 = vmatmul.msk.f32.vlgmr.msra.gmra.mxu0 %vm22_vm0, %v15_v1  ;;  %703 = vmatmul.msk.f32.vlgmr.msra.gmra.mxu1 %vm22_vm0, %v16_v2  ;;  %v728_v3 = vld [vmem:[%s951_s2] ss:$0 sm:$0xff]  ;;  %v755_v29 = vmov 2102212464  }
   0x4   :  { %v756_v31 = vmov 920167782   ;;  %v757_v35 = vmov 683565275   ;;  %v758_v37 = vmov 2475754826  }
   0x5   :  { %v759_v39 = vmov 2131351028   ;;  %v760_v42 = vmov 1326507024   ;;  %s762_s0 = smov 32   ;;  %s763_s1 = smov [#allocation2]  }
   0x6   :  { %s688_s2 = sshll.u32 %s763_s1, 4  ;;  %s690_s22 = sshll.u32 %s952_s3, 4  ;;  %s689_s2 = int_to_ptr.vmem [resolvable:$true] %s688_s2  ;;  %s691_s22 = int_to_ptr.hbm [resolvable:$true] %s690_s22 }
   0x7   :  { %s764_s23 = smov 128   ;;  %s765_s24 = smov 8  }
  0x80   :  { %v46_v4 = vpop.f32.mrf.mxu0  ;;  %v49_v5 = vpop.f32.mrf.mxu1 }
  0x81   :  { %v798_v6 = vadd.f32 %v728_v3, %v46_v4  ;;  %v800_v7 = vadd.f32 %v728_v3, %v49_v5 }
  0x83   :  { %v55_v8 = vand.u32 2139095040, %v798_v6  ;;  %v210_v9 = vand.u32 2139095040, %v800_v7  ;;  %v52_v10 = vand.u32 2147483647, %v798_v6  ;;  %v207_v13 = vand.u32 2147483647, %v800_v7 }
  0x85   :  { %v56_v11 = vshrl.u32 %v55_v8, 23  ;;  %v211_v12 = vshrl.u32 %v210_v9, 23  ;;  %v59_v14 = vand.u32 8388607, %v52_v10  ;;  %v214_v19 = vand.u32 8388607, %v207_v13 }
  0x87   :  { %v704_v15 = vadd.s32 4294967169, %v56_v11  ;;  %v707_v16 = vadd.s32 4294967169, %v211_v12  ;;  %v60_v20 = vor.u32 8388608, %v59_v14  ;;  %v215_v26 = vor.u32 8388608, %v214_v19 }
  0x89   :  { %v62_v17 = vadd.s32 1, %v704_v15  ;;  %v217_v18 = vadd.s32 1, %v707_v16  ;;  %v812_v27 = vshll.u32 %v60_v20, 8  ;;  %v824_v54 = vshll.u32 %v215_v26, 8 }
  0x8b   :  { %vm63_vm1 = vcmp.gt.s32.totalorder %v62_v17, 0  ;;  %vm218_vm2 = vcmp.gt.s32.totalorder %v217_v18, 0  ;;  %v101_v55 = vand.u32 65535, %v812_v27  ;;  %v102_v57 = vshrl.u32 %v812_v27, 16 }
  0x8c   :  { %v64_v21 = vsel %vm63_vm1, %v62_v17, 0  ;;  %v219_v22 = vsel %vm218_vm2, %v217_v18, 0 }
  0x8d   :  { %v66_v23 = vand.u32 31, %v64_v21  ;;  %v221_v24 = vand.u32 31, %v219_v22  ;;  %v810_v25 = vshrl.u32 %v64_v21, 5  ;;  %v814_v33 = vshrl.u32 %v219_v22, 5 }
  0x8f   :  { %v67_v28 = vsub.s32 32, %v66_v23  ;;  %v78_v30 = vshll.u32 %v755_v29, %v66_v23  ;;  %v81_v32 = vshll.u32 %v756_v31, %v66_v23  ;;  %v816_v34 = vsub.s32 32, %v221_v24 }
  0x90   :  { %v224_v36 = vshll.u32 %v757_v35, %v221_v24  ;;  %v227_v38 = vshll.u32 %v758_v37, %v221_v24  ;;  %v230_v40 = vshll.u32 %v759_v39, %v221_v24  ;;  %v233_v44 = vshll.u32 %v755_v29, %v221_v24 }
  0x91   :  { %v79_v41 = vshrl.u32 %v756_v31, %v67_v28  ;;  %v82_v43 = vshrl.u32 %v760_v42, %v67_v28  ;;  %v236_v45 = vshll.u32 %v756_v31, %v221_v24  ;;  %v225_v46 = vshrl.u32 %v758_v37, %v816_v34 }
  0x92   :  { %v228_v47 = vshrl.u32 %v759_v39, %v816_v34  ;;  %v231_v48 = vshrl.u32 %v755_v29, %v816_v34  ;;  %v234_v49 = vshrl.u32 %v756_v31, %v816_v34  ;;  %v237_v52 = vshrl.u32 %v760_v42, %v816_v34 }
  0x93   :  { %v80_v50 = vor.u32 %v79_v41, %v78_v30  ;;  %v83_v51 = vor.u32 %v82_v43, %v81_v32  ;;  %vm87_vm3 = vcmp.lt.s32.totalorder %v810_v25, 4  ;;  %vm239_vm4 = vcmp.lt.s32.totalorder %v814_v33, 1 }
  0x94   :  { %v235_v53 = vor.u32 %v234_v49, %v233_v44  ;;  %v238_v56 = vor.u32 %v237_v52, %v236_v45  ;;  %v830_v58 = vor.u32 %v225_v46, %v224_v36  ;;  %v832_v59 = vor.u32 %v228_v47, %v227_v38 }
  0x95   :  { %v834_v60 = vor.u32 %v231_v48, %v230_v40  ;;  %vm242_vm5 = vcmp.lt.s32.totalorder %v814_v33, 4  ;;  %v93_v61 = vsel %vm87_vm3, %v80_v50, 920167782  ;;  %v97_v62 = vsel %vm87_vm3, %v83_v51, 1326507024 }
  0x96   :  { %v69_v63 = vshll.u32 %v757_v35, %v66_v23  ;;  %v70_v0 = vshrl.u32 %v758_v37, %v67_v28  ;;  %vm241_vm6 = vcmp.lt.s32.totalorder %v814_v33, 3  ;;  %v248_v1 = vsel %vm242_vm5, %v235_v53, 920167782 }
  0x97   :  { %v72_v2 = vshll.u32 %v758_v37, %v66_v23  ;;  %v73_v3 = vshrl.u32 %v759_v39, %v67_v28  ;;  %v252_v4 = vsel %vm242_vm5, %v238_v56, 1326507024  ;;  %v75_v8 = vshll.u32 %v759_v39, %v66_v23 }
  0x98   :  { %v71_v5 = vor.u32 %v70_v0, %v69_v63  ;;  %v76_v9 = vshrl.u32 %v755_v29, %v67_v28  ;;  %v247_v11 = vsel %vm239_vm4, %v830_v58, %v832_v59  ;;  %v251_v12 = vsel %vm239_vm4, %v832_v59, %v834_v60 }
  0x99   :  { %v74_v14 = vor.u32 %v73_v3, %v72_v2  ;;  %vm86_vm7 = vcmp.lt.s32.totalorder %v810_v25, 3  ;;  %v68_v15 = vshrl.u32 %v757_v35, %v67_v28  ;;  %vm84_vm8 = vcmp.lt.s32.totalorder %v810_v25, 1 }
  0x9a   :  { %v77_v16 = vor.u32 %v76_v9, %v75_v8  ;;  %v98_v17 = vsel %vm86_vm7, %v80_v50, %v97_v62  ;;  %v249_v18 = vsel %vm241_vm6, %v834_v60, %v248_v1  ;;  %v253_v19 = vsel %vm241_vm6, %v235_v53, %v252_v4 }
  0x9b   :  { %v92_v20 = vsel %vm84_vm8, %v71_v5, %v74_v14  ;;  %vm240_vm9 = vcmp.lt.s32.totalorder %v814_v33, 2  ;;  %vm85_vm10 = vcmp.lt.s32.totalorder %v810_v25, 2  ;;  %v88_v24 = vsel %vm84_vm8, %v68_v15, %v71_v5 }
  0x9c   :  { %v89_v21 = vsel %vm87_vm3, %v77_v16, 2102212464  ;;  %v94_v22 = vsel %vm86_vm7, %v77_v16, %v93_v61  ;;  %v96_v23 = vsel %vm84_vm8, %v74_v14, %v77_v16  ;;  %v869_v36 = vsel %vm240_vm9, %v247_v11, %v249_v18 }
  0x9d   :  { %v90_v26 = vsel %vm86_vm7, %v74_v14, %v89_v21  ;;  %v95_v28 = vsel %vm85_vm10, %v92_v20, %v94_v22  ;;  %v99_v29 = vsel %vm85_vm10, %v96_v23, %v98_v17  ;;  %v256_v37 = vand.u32 65535, %v824_v54 }
  0x9e   :  { %v103_v30 = vand.u32 65535, %v99_v29  ;;  %v104_v31 = vshrl.u32 %v99_v29, 16  ;;  %v125_v32 = vand.u32 65535, %v95_v28  ;;  %v126_v38 = vshrl.u32 %v95_v28, 16 }
  0x9f   :  { %v873_v39 = vshrl.u32 %v824_v54, 16  ;;  %v875_v25 = vsel %vm85_vm10, %v88_v24, %v90_v26  ;;  %v254_v44 = vsel %vm240_vm9, %v251_v12, %v253_v19  ;;  %v280_v45 = vand.u32 65535, %v869_v36 }
  0xa0   :  { %v106_v40 = vmul.u32 %v104_v31, %v101_v55  ;;  %v107_v41 = vmul.u32 %v103_v30, %v102_v57  ;;  %v128_v42 = vmul.u32 %v126_v38, %v101_v55  ;;  %v129_v43 = vmul.u32 %v125_v32, %v102_v57 }
  0xa1   :  { %v105_v46 = vmul.u32 %v103_v30, %v101_v55  ;;  %v108_v47 = vmul.u32 %v104_v31, %v102_v57  ;;  %v127_v49 = vmul.u32 %v125_v32, %v101_v55  ;;  %v130_v51 = vmul.u32 %v126_v38, %v102_v57 }
  0xa2   :  { %v109_v48 = vshll.u32 %v106_v40, 16  ;;  %v111_v50 = vshll.u32 %v107_v41, 16  ;;  %v131_v52 = vshll.u32 %v128_v42, 16  ;;  %v133_v53 = vshll.u32 %v129_v43, 16 }
  0xa3   :  { %v258_v61 = vand.u32 65535, %v254_v44  ;;  %v259_v62 = vshrl.u32 %v254_v44, 16  ;;  %v761_v63 = vmov 0   ;;  %v281_v2 = vshrl.u32 %v869_v36, 16 }
  0xa4   :  { %vm113_vm11 = vc.u32 %v105_v46, %v109_v48  ;;  %v115_v56 = vadd.s32 %v109_v48, %v105_v46  ;;  %vm135_vm12 = vc.u32 %v127_v49, %v131_v52  ;;  %v137_v1 = vadd.s32 %v131_v52, %v127_v49 }
  0xa5   :  { %v114_v0 = vsel %vm113_vm11, 1, %v761_v63  ;;  %v110_v3 = vshrl.u32 %v106_v40, 16  ;;  %v136_v5 = vsel %vm135_vm12, 1, %v761_v63  ;;  %v112_v8 = vshrl.u32 %v107_v41, 16 }
  0xa6   :  { %v116_v4 = vadd.s32 %v114_v0, %v108_v47  ;;  %vm117_vm13 = vc.u32 %v115_v56, %v111_v50  ;;  %v138_v9 = vadd.s32 %v136_v5, %v130_v51  ;;  %vm139_vm14 = vc.u32 %v137_v1, %v133_v53 }
  0xa7   :  { %v118_v55 = vsel %vm117_vm13, 1, %v761_v63  ;;  %v140_v11 = vsel %vm139_vm14, 1, %v761_v63  ;;  %v261_v12 = vmul.u32 %v259_v62, %v256_v37  ;;  %v262_v14 = vmul.u32 %v258_v61, %v873_v39 }
  0xa8   :  { %v120_v57 = vadd.s32 %v118_v55, %v116_v4  ;;  %v132_v15 = vshrl.u32 %v128_v42, 16  ;;  %v134_v16 = vshrl.u32 %v129_v43, 16  ;;  %v142_v17 = vadd.s32 %v140_v11, %v138_v9 }
  0xa9   :  { %v283_v18 = vmul.u32 %v281_v2, %v256_v37  ;;  %v882_v20 = vadd.s32 %v137_v1, %v133_v53  ;;  %v260_v21 = vmul.u32 %v258_v61, %v256_v37  ;;  %v264_v22 = vshll.u32 %v261_v12, 16 }
  0xaa   :  { %v121_v19 = vadd.s32 %v120_v57, %v110_v3  ;;  %v143_v23 = vadd.s32 %v142_v17, %v132_v15  ;;  %v263_v24 = vmul.u32 %v259_v62, %v873_v39  ;;  %v266_v26 = vshll.u32 %v262_v14, 16 }
  0xab   :  { %v284_v28 = vmul.u32 %v280_v45, %v873_v39  ;;  %vm268_vm15 = vc.u32 %v260_v21, %v264_v22  ;;  %v270_v30 = vadd.s32 %v264_v22, %v260_v21  ;;  %v286_v31 = vshll.u32 %v283_v18, 16 }
  0xac   :  { %v122_v29 = vadd.s32 %v121_v19, %v112_v8  ;;  %v144_v32 = vadd.s32 %v143_v23, %v134_v16  ;;  %v145_v36 = vmul.u32 %v812_v27, %v875_v25  ;;  %v269_v38 = vsel %vm268_vm15, 1, %v761_v63 }
  0xad   :  { %v282_v40 = vmul.u32 %v280_v45, %v256_v37  ;;  %v265_v41 = vshrl.u32 %v261_v12, 16  ;;  %v271_v42 = vadd.s32 %v269_v38, %v263_v24  ;;  %vm272_vm1 = vc.u32 %v270_v30, %v266_v26 }
  0xae   :  { %vm147_vm0 = vc.u32 %v122_v29, %v882_v20  ;;  %v148_v43 = vadd.s32 1, %v144_v32  ;;  %v273_v44 = vsel %vm272_vm1, 1, %v761_v63  ;;  %v285_v46 = vmul.u32 %v281_v2, %v873_v39 }
  0xaf   :  { %vm290_vm2 = vc.u32 %v282_v40, %v286_v31  ;;  %v275_v47 = vadd.s32 %v273_v44, %v271_v42  ;;  %v288_v48 = vshll.u32 %v284_v28, 16  ;;  %v292_v50 = vadd.s32 %v286_v31, %v282_v40 }
  0xb0   :  { %v291_v49 = vsel %vm290_vm2, 1, %v761_v63  ;;  %v149_v51 = vsel %vm147_vm0, %v148_v43, %v144_v32  ;;  %v223_v37 = vshrl.u32 %v757_v35, %v816_v34  ;;  %v244_v25 = vsel %vm242_vm5, %v834_v60, 2102212464 }
  0xb1   :  { %v293_v52 = vadd.s32 %v291_v49, %v285_v46  ;;  %v150_v53 = vadd.s32 %v149_v51, %v145_v36  ;;  %v276_v27 = vadd.s32 %v275_v47, %v265_v41  ;;  %vm294_vm3 = vc.u32 %v292_v50, %v288_v48 }
  0xb2   :  { %v295_v45 = vsel %vm294_vm3, 1, %v761_v63  ;;  %v267_v39 = vshrl.u32 %v262_v14, 16  ;;  %v287_v61 = vshrl.u32 %v283_v18, 16  ;;  %v289_v2 = vshrl.u32 %v284_v28, 16 }
  0xb3   :  { %v151_v56 = vadd.s32 536870912, %v150_v53  ;;  %v297_v62 = vadd.s32 %v295_v45, %v293_v52  ;;  %v243_v4 = vsel %vm239_vm4, %v223_v37, %v830_v58  ;;  %v245_v34 = vsel %vm241_vm6, %v832_v59, %v244_v25 }
  0xb4   :  { %v277_v1 = vadd.s32 %v276_v27, %v267_v39  ;;  %v296_v5 = vadd.s32 %v292_v50, %v288_v48  ;;  %v246_v8 = vsel %vm240_vm9, %v243_v4, %v245_v34  ;;  %v146_v18 = vadd.s32 %v882_v20, %v122_v29 }
  0xb5   :  { %v152_v0 = vshrl.u32 %v151_v56, 30  ;;  %v298_v3 = vadd.s32 %v297_v62, %v287_v61  ;;  %v300_v57 = vmul.u32 %v824_v54, %v246_v8  ;;  %vm910_vm9 = vcmp.le.f32.partialorder %v52_v10, 0.7853982 }
  0xb6   :  { %vm302_vm5 = vc.u32 %v277_v1, %v296_v5  ;;  %vm54_vm10 = vcmp.lt.s32.totalorder %v798_v6, 0  ;;  %v301_v47 = vadd.s32 %v296_v5, %v277_v1  ;;  %vm209_vm11 = vcmp.lt.s32.totalorder %v800_v7, 0 }
  0xb7   :  { %v153_v35 = vshll.u32 %v152_v0, 30  ;;  %v299_v60 = vadd.s32 %v298_v3, %v289_v2  ;;  %v176_v20 = vsub.s32 4, %v152_v0  ;;  %vm923_vm12 = vcmp.le.f32.partialorder %v207_v13, 0.7853982 }
  0xb8   :  { %vm362_vm3 = vcmask 261120  }
  0xb9   :  { %v154_v63 = vsub.s32 %v150_v53, %v153_v35  ;;  %v303_v55 = vadd.s32 1, %v299_v60  ;;  %v177_v50 = vsel %vm54_vm10, %v176_v20, %v152_v0 }
  0xba   :  { %v179_v39 = vsel %vm910_vm9, 0, %v177_v50 }
  0xbb   :  { %vm155_vm7 = vcmp.lt.s32.totalorder %v154_v63, 0  ;;  %v156_v9 = vsub.s32 0, %v154_v63  ;;  %v304_v11 = vsel %vm302_vm5, %v303_v55, %v299_v60  ;;  %v196_v34 = vadd.s32 3, %v179_v39 }
  0xbc   :  { %v305_v14 = vadd.s32 %v304_v11, %v300_v57  ;;  %v509_v57 = vand.u32 3, %v179_v39  ;;  %vm195_vm5 = vweird.f32 %v798_v6 }
  0xbd   :  { %v157_v12 = vsel %vm155_vm7, %v156_v9, %v154_v63  ;;  %v197_v9 = vand.u32 3, %v196_v34 }
  0xbe   :  { %v158_v58 = vclz %v157_v12  ;;  %v306_v16 = vadd.s32 536870912, %v305_v14  ;;  %vm510_vm14 = vcmp.lt.s32.totalorder %v509_v57, 2  ;;  %vm511_vm15 = vcmp.eq.s32.totalorder %v509_v57, 0 }
  0xbf   :  { %vm198_vm13 = vcmp.lt.s32.totalorder %v197_v9, 2  ;;  %vm514_vm0 = vcmp.eq.s32.totalorder %v509_v57, 2  ;;  %vm199_vm1 = vcmp.eq.s32.totalorder %v197_v9, 0  ;;  %vm202_vm2 = vcmp.eq.s32.totalorder %v197_v9, 2 }
  0xc0   :  { %v705_v15 = vadd.s32 4294967294, %v158_v58  ;;  %v904_v59 = vshrl.u32 %v306_v16, 30 }
  0xc2   :  { %vm706_vm4 = vcmp.lt.s32.totalorder %v705_v15, 0  ;;  %v308_v21 = vshll.u32 %v904_v59, 30 }
  0xc3   :  { %v161_v17 = vsel %vm706_vm4, 0, %v705_v15  ;;  %v331_v15 = vsub.s32 4, %v904_v59 }
  0xc4   :  { %v162_v33 = vsub.s32 32, %v161_v17  ;;  %v166_v19 = vsub.s32 4294967266, %v161_v17  ;;  %v163_v22 = vshll.u32 %v154_v63, %v161_v17  ;;  %v309_v54 = vsub.s32 %v305_v14, %v308_v21 }
  0xc6   :  { %v164_v23 = vshrl.u32 %v146_v18, %v162_v33  ;;  %v167_v24 = vadd.s32 127, %v166_v19  ;;  %vm310_vm6 = vcmp.lt.s32.totalorder %v309_v54, 0  ;;  %v311_v30 = vsub.s32 0, %v309_v54 }
  0xc8   :  { %v165_v26 = vor.u32 %v164_v23, %v163_v22  ;;  %v168_v28 = vshll.u32 %v167_v24, 23  ;;  %v312_v32 = vsel %vm310_vm6, %v311_v30, %v309_v54  ;;  %v332_v22 = vsel %vm209_vm11, %v331_v15, %v904_v59 }
  0xc9   :  { %v313_v40 = vclz %v312_v32  ;;  %v334_v59 = vsel %vm923_vm12, 0, %v332_v22 }
  0xca   :  { %v169_v31 = vor.u32 4788187, %v168_v28  ;;  %v172_v38 = vcvt.s32.f32 %v165_v26 }
  0xcb   :  { %v708_v42 = vadd.s32 4294967294, %v313_v40 }
  0xcc   :  { %v170_v36 = vand.u32 2147483647, %v169_v31 }
  0xcd   :  { %vm709_vm8 = vcmp.lt.s32.totalorder %v708_v42, 0 }
  0xce   :  { %v173_v41 = vmul.f32 %v172_v38, %v170_v36  ;;  %v316_v44 = vsel %vm709_vm8, 0, %v708_v42 }
  0xcf   :  { %v317_v48 = vsub.s32 32, %v316_v44  ;;  %v321_v49 = vsub.s32 4294967266, %v316_v44  ;;  %v318_v53 = vshll.u32 %v309_v54, %v316_v44 }
  0xd0   :  { %v174_v29 = vxor.u32 2147483648, %v173_v41 }
  0xd1   :  { %v319_v27 = vshrl.u32 %v301_v47, %v317_v48  ;;  %v322_v37 = vadd.s32 127, %v321_v49  ;;  %v663_v47 = vand.u32 3, %v334_v59 }
  0xd2   :  { %v175_v46 = vsel %vm54_vm10, %v174_v29, %v173_v41  ;;  %v351_v29 = vadd.s32 3, %v334_v59 }
  0xd3   :  { %v178_v51 = vsel %vm910_vm9, %v798_v6, %v175_v46  ;;  %v320_v45 = vor.u32 %v319_v27, %v318_v53  ;;  %v323_v56 = vshll.u32 %v322_v37, 23  ;;  %vm664_vm7 = vcmp.lt.s32.totalorder %v663_v47, 2 }
  0xd4   :  { %v180_v52 = vmul.f32 %v178_v51, %v178_v51  ;;  %v352_v48 = vand.u32 3, %v351_v29  ;;  %vm665_vm4 = vcmp.eq.s32.totalorder %v663_v47, 0  ;;  %vm668_vm10 = vcmp.eq.s32.totalorder %v663_v47, 2 }
  0xd5   :  { %v324_v1 = vor.u32 4788187, %v323_v56  ;;  %v327_v4 = vcvt.s32.f32 %v320_v45 }
  0xd6   :  { %v181_v10 = vmul.f32 -0.001358992, %v180_v52  ;;  %v188_v25 = vmul.f32 -0.00019511016, %v180_v52  ;;  %vm353_vm6 = vcmp.lt.s32.totalorder %v352_v48, 2  ;;  %vm354_vm8 = vcmp.eq.s32.totalorder %v352_v48, 0 }
  0xd7   :  { %v325_v3 = vand.u32 2147483647, %v324_v1  ;;  %vm357_vm9 = vcmp.eq.s32.totalorder %v352_v48, 2 }
  0xd8   :  { %v182_v61 = vadd.f32 0.041655596, %v181_v10  ;;  %v189_v62 = vadd.f32 0.008332121, %v188_v25 }
  0xd9   :  { %v328_v60 = vmul.f32 %v327_v4, %v325_v3 }
  0xda   :  { %v183_v2 = vmul.f32 %v182_v61, %v180_v52  ;;  %v190_v0 = vmul.f32 %v189_v62, %v180_v52 }
  0xdb   :  { %v329_v55 = vxor.u32 2147483648, %v328_v60 }
  0xdc   :  { %v184_v35 = vadd.f32 -0.4999988, %v183_v2  ;;  %v191_v5 = vadd.f32 -0.16666654, %v190_v0 }
  0xdd   :  { %v330_v14 = vsel %vm209_vm11, %v329_v55, %v328_v60  ;;  %vm350_vm11 = vweird.f32 %v800_v7 }
  0xde   :  { %v185_v63 = vmul.f32 %v184_v35, %v180_v52  ;;  %v192_v8 = vmul.f32 %v191_v5, %v180_v52  ;;  %v333_v16 = vsel %vm923_vm12, %v800_v7, %v330_v14  ;;  %vm681_vm12 = vcmask 523520  }
  0xdf   :  { %v335_v33 = vmul.f32 %v333_v16, %v333_v16 }
  0xe0   :  { %v186_v11 = vadd.f32 1.0, %v185_v63  ;;  %v193_v12 = vadd.f32 1.0, %v192_v8 }
  0xe1   :  { %v336_v19 = vmul.f32 -0.001358992, %v335_v33  ;;  %v343_v23 = vmul.f32 -0.00019511016, %v335_v33 }
  0xe2   :  { %v194_v17 = vmul.f32 %v193_v12, %v178_v51  ;;  %v203_v18 = vxor.u32 2147483648, %v186_v11 }
  0xe3   :  { %v337_v28 = vadd.f32 0.041655596, %v336_v19  ;;  %v344_v32 = vadd.f32 0.008332121, %v343_v23 }
  0xe4   :  { %v200_v13 = vxor.u32 2147483648, %v194_v17  ;;  %v516_v21 = vsel %vm514_vm0, %v203_v18, %v194_v17  ;;  %v204_v26 = vsel %vm202_vm2, %v203_v18, %v194_v17 }
  0xe5   :  { %v338_v40 = vmul.f32 %v337_v28, %v335_v33  ;;  %v345_v41 = vmul.f32 %v344_v32, %v335_v33 }
  0xe6   :  { %v513_v24 = vsel %vm511_vm15, %v186_v11, %v200_v13  ;;  %v201_v54 = vsel %vm199_vm1, %v186_v11, %v200_v13 }
  0xe7   :  { %v517_v30 = vsel %vm510_vm14, %v513_v24, %v516_v21  ;;  %v205_v31 = vsel %vm198_vm13, %v201_v54, %v204_v26  ;;  %v339_v42 = vadd.f32 -0.4999988, %v338_v40  ;;  %v346_v20 = vadd.f32 -0.16666654, %v345_v41 }
  0xe8   :  { %v518_v36 = vsel %vm195_vm5, nan, %v517_v30  ;;  %v206_v38 = vsel %vm195_vm5, nan, %v205_v31 }
  0xe9   :  { %675 = vrot.lane.b32.xlu0 %v518_v36, %s762_s0  ;;  %363 = vst.msk [vmem:[#allocation2] sm:$0xff] %vm362_vm3, %v206_v38  ;;  %v340_v6 = vmul.f32 %v339_v42, %v335_v33  ;;  %v347_v43 = vmul.f32 %v346_v20, %v335_v33 }
  0xeb   :  { %v341_v44 = vadd.f32 1.0, %v340_v6  ;;  %v348_v46 = vadd.f32 1.0, %v347_v43 }
  0xed   :  { %v349_v49 = vmul.f32 %v348_v46, %v333_v16  ;;  %v358_v50 = vxor.u32 2147483648, %v341_v44 }
  0xef   :  { %v355_v51 = vxor.u32 2147483648, %v349_v49  ;;  %v359_v53 = vsel %vm357_vm9, %v358_v50, %v349_v49  ;;  %v670_v37 = vsel %vm668_vm10, %v358_v50, %v349_v49 }
  0xf1   :  { %v356_v52 = vsel %vm354_vm8, %v341_v44, %v355_v51  ;;  %v667_v27 = vsel %vm665_vm4, %v341_v44, %v355_v51 }
  0xf2   :  { %v360_v10 = vsel %vm353_vm6, %v356_v52, %v359_v53  ;;  %v671_v25 = vsel %vm664_vm7, %v667_v27, %v670_v37 }
  0xf3   :  { %v361_v45 = vsel %vm350_vm11, nan, %v360_v10  ;;  %v672_v56 = vsel %vm350_vm11, nan, %v671_v25 }
  0xf4   :  { %677 = vrot.lane.b32.xlu0 %v672_v56, %s762_s0  ;;  %364 = vst.msk [vmem:[#allocation2 + $0x8] sm:$0xff] %vm362_vm3, %v361_v45 }
 0x15b   :  { %v676_v39 = vpop.permute.xlu0 %675 }
 0x15c   :  { %682 = vst.msk [vmem:[#allocation2] sm:$0xff] %vm681_vm12, %v676_v39 }
 0x166   :  { %v678_v7 = vpop.permute.xlu0 %677 }
 0x167   :  { %683 = vst.msk [vmem:[#allocation2 + $0x8] sm:$0xff] %vm681_vm12, %v678_v7 }
 0x168   :  { %696 = dma.vmem_to_hbm [thread:$0]  %s689_s2, 256, %s691_s22, [#allocation3], %s764_s23, %s764_s23, %s765_s24  }
 0x169   :  { %753 = dma.done.wait [#allocation3], 256  }
 0x16a   :  { %754 = vsyncadd [#allocation3], 4294967040 }
 0x16b   :  { %701 = vsyncpa [#allocation3], 1 }

</bundles_post_ra>
